<compile_context>
chip_gen: v5e
topology: v5e:2x2
jax: 0.10.0
libtpu: 0.0.40
codegen_flags: <defaults>
</compile_context>

<pallas_src>
import jax
import jax.numpy as jnp
from jax.experimental import pallas as pl
from jax.experimental.pallas import tpu as pltpu


# ---------------------------------------------------------------------------
# Single-row kernel (faithful to the module: M = 1)
# ---------------------------------------------------------------------------
def _classifier_kernel(h1_ref, h2_ref, w_ref, b_ref, o_ref):
    # h1_ref: (1, H)  VMEM   first hidden state (flattened)
    # h2_ref: (1, H)  VMEM   second hidden state (flattened)
    # w_ref:  (2, 2H) VMEM   nn.Linear weight, native (out, in) lane-dense layout
    # b_ref:  (2,)    SMEM   bias as two f32 scalars
    # o_ref:  (1, 2)  VMEM   output logits
    # In-kernel concat (lane concat of two VMEM-resident values; no HBM trip).
    h = jnp.concatenate([h1_ref[...], h2_ref[...]], axis=-1)        # (1, 2H)
    w = w_ref[...]                                                  # (2, 2H)

    # One fused broadcast multiply covers both output rows, then a single
    # lane (XLU) reduce.  Product stays in the input dtype (bf16 native on
    # v6e/v7x); accumulation is f32 to match PyTorch Linear.
    s = jnp.sum((h * w).astype(jnp.float32), axis=-1, keepdims=True)  # (2, 1)

    # Epilogue: bias from SMEM scalars, assemble the (1, 2) lane-major output.
    out = jnp.concatenate([s[0:1, :] + b_ref[0], s[1:2, :] + b_ref[1]], axis=-1)
    o_ref[...] = out.astype(o_ref.dtype)


def classifier_forward(hidden_1, hidden_2, weight, bias):
    """Equivalent of Classifier.forward.

    hidden_1, hidden_2: arrays that each flatten to (1, H).
    weight: (2, 2H)  -- PyTorch nn.Linear layout (out_features, in_features)
    bias:   (2,)
    returns: (1, 2) in the activation dtype.
    """
    h1 = hidden_1.reshape(1, -1)
    h2 = hidden_2.reshape(1, -1)
    H = h1.shape[1]
    assert h2.shape[1] == H and weight.shape == (2, 2 * H)

    bias_sc = bias.astype(jnp.float32).reshape(2)   # SMEM scalars (f32)

    itemsize = jnp.dtype(h1.dtype).itemsize
    cost = pl.CostEstimate(
        flops=2 * 2 * 2 * H,                                  # 2 outputs x 2H MACs
        transcendentals=0,
        bytes_accessed=(2 * H + 2 * 2 * H + 2) * itemsize + 2 * 4,
    )

    vmem = pl.BlockSpec(memory_space=pltpu.MemorySpace.VMEM)  # whole array in VMEM
    smem = pl.BlockSpec(memory_space=pltpu.MemorySpace.SMEM)  # whole array in SMEM

    return pl.pallas_call(
        _classifier_kernel,
        out_shape=jax.ShapeDtypeStruct((1, 2), h1.dtype),
        in_specs=[vmem, vmem, vmem, smem],
        out_specs=vmem,
        cost_estimate=cost,
    )(h1, h2, weight, bias_sc)


# ---------------------------------------------------------------------------
# Batched variant: many (h1, h2) pairs stacked into a (B, 2H) activation.
# ---------------------------------------------------------------------------
def _classifier_batched_kernel(h_ref, w_ref, b_ref, o_ref):
    # h_ref: (tb, 2H) VMEM, w_ref: (2, 2H) VMEM, b_ref: (2,) SMEM, o_ref: (tb, 2)
    h = h_ref[...]
    w = w_ref[...]
    # Batch occupies sublanes, so each output column needs its own broadcast
    # multiply + lane reduce (still VPU/XLU only; the op is memory-bound on h).
    s0 = jnp.sum((h * w[0:1, :]).astype(jnp.float32), axis=-1, keepdims=True)
    s1 = jnp.sum((h * w[1:2, :]).astype(jnp.float32), axis=-1, keepdims=True)
    out = jnp.concatenate([s0 + b_ref[0], s1 + b_ref[1]], axis=-1)   # (tb, 2)
    o_ref[...] = out.astype(o_ref.dtype)


def classifier_forward_batched(h, weight, bias, *, block_rows=256):
    """Batched classifier: h is (B, 2H) of stacked concat(h1, h2) rows.

    Returns (B, 2).  Batch grid axis is 'parallel' (2x on v7x's dual TCs).
    """
    B, in_features = h.shape
    assert weight.shape == (2, in_features)

    tb = B if B <= block_rows else block_rows
    if tb != B:
        assert tb % 8 == 0 and B % tb == 0, (
            "batch must tile into sublane-aligned (multiple-of-8) blocks")
    grid = (pl.cdiv(B, tb),)

    bias_sc = bias.astype(jnp.float32).reshape(2)

    itemsize = jnp.dtype(h.dtype).itemsize
    cost = pl.CostEstimate(
        flops=2 * B * 2 * in_features,
        transcendentals=0,
        bytes_accessed=(B * in_features + 2 * in_features) * itemsize
        + 2 * 4 + B * 2 * itemsize,
    )

    return pl.pallas_call(
        _classifier_batched_kernel,
        out_shape=jax.ShapeDtypeStruct((B, 2), h.dtype),
        grid=grid,
        in_specs=[
            pl.BlockSpec((tb, in_features), lambda i: (i, 0)),   # activations
            pl.BlockSpec((2, in_features), lambda i: (0, 0)),    # weight (resident)
            pl.BlockSpec(memory_space=pltpu.MemorySpace.SMEM),   # bias scalars
        ],
        out_specs=pl.BlockSpec((tb, 2), lambda i: (i, 0)),
        cost_estimate=cost,
        compiler_params=pltpu.CompilerParams(
            dimension_semantics=("parallel",)),
    )(h, weight, bias_sc)


if __name__ == "__main__":
    hidden_size = 32  # small synthetic size

    key = jax.random.PRNGKey(0)
    k1, k2, kw, kb, kh = jax.random.split(key, 5)

    # Deterministic synthetic inputs: each hidden state flattens to (1, hidden_size).
    hidden_1 = jax.random.normal(k1, (1, hidden_size), dtype=jnp.float32)
    hidden_2 = jax.random.normal(k2, (1, hidden_size), dtype=jnp.float32)

    # nn.Linear(hidden_size * 2, 2) parameters, PyTorch-style uniform init.
    fan_in = 2 * hidden_size
    bound = 1.0 / (fan_in ** 0.5)
    weight = jax.random.uniform(kw, (2, fan_in), minval=-bound, maxval=bound,
                                dtype=jnp.float32)
    bias = jax.random.uniform(kb, (2,), minval=-bound, maxval=bound,
                              dtype=jnp.float32)

    # --- module-faithful single-row path -----------------------------------
    out = classifier_forward(hidden_1, hidden_2, weight, bias)
    out = jax.block_until_ready(out)

    ref = jnp.concatenate([hidden_1.reshape(1, -1), hidden_2.reshape(1, -1)],
                          axis=1) @ weight.T + bias
    assert out.shape == (1, 2)
    assert jnp.allclose(out, ref, atol=1e-5, rtol=1e-5)

    # --- batched path (many (h1, h2) pairs per call) -----------------------
    B = 16
    h_batch = jax.random.normal(kh, (B, fan_in), dtype=jnp.float32)
    out_b = classifier_forward_batched(h_batch, weight, bias, block_rows=8)
    out_b = jax.block_until_ready(out_b)

    ref_b = h_batch @ weight.T + bias
    assert out_b.shape == (B, 2)
    assert jnp.allclose(out_b, ref_b, atol=1e-5, rtol=1e-5)

    print("KERNEL_OK")
</pallas_src>

<mosaic_0001>
module attributes {stable_mosaic.version = 11 : i64} {
  func.func @_classifier_kernel(%arg0: memref<1x32xf32, #tpu.memory_space<vmem>>, %arg1: memref<1x32xf32, #tpu.memory_space<vmem>>, %arg2: memref<2x64xf32, #tpu.memory_space<vmem>>, %arg3: memref<2xf32, #tpu.memory_space<smem>>, %arg4: memref<1x2xf32, #tpu.memory_space<vmem>>) attributes {dimension_semantics = [], scalar_prefetch = 0 : i64, scratch_operands = 0 : i64, tpu.core_type = #tpu.core_type<tc>} {
    %c0 = arith.constant 0 : index
    %c0_0 = arith.constant 0 : index
    %0 = vector.load %arg0[%c0, %c0_0] : memref<1x32xf32, #tpu.memory_space<vmem>>, vector<1x32xf32>
    %c0_1 = arith.constant 0 : index
    %c0_2 = arith.constant 0 : index
    %1 = vector.load %arg1[%c0_1, %c0_2] : memref<1x32xf32, #tpu.memory_space<vmem>>, vector<1x32xf32>
    %2 = tpu.concatenate %0, %1 in 1 : vector<1x32xf32>, vector<1x32xf32> -> vector<1x64xf32>
    %c0_3 = arith.constant 0 : index
    %c0_4 = arith.constant 0 : index
    %3 = vector.load %arg2[%c0_3, %c0_4] : memref<2x64xf32, #tpu.memory_space<vmem>>, vector<2x64xf32>
    %4 = vector.broadcast %2 : vector<1x64xf32> to vector<2x64xf32>
    %5 = arith.mulf %4, %3 : vector<2x64xf32>
    %cst = arith.constant dense<0.000000e+00> : vector<2xf32>
    %6 = vector.multi_reduction <add>, %5, %cst [1] : vector<2x64xf32> to vector<2xf32>
    %7 = vector.shape_cast %6 : vector<2xf32> to vector<2x1xf32>
    %8 = vector.extract_strided_slice %7 {offsets = [0, 0], sizes = [1, 1], strides = [1, 1]} : vector<2x1xf32> to vector<1x1xf32>
    %c0_5 = arith.constant 0 : index
    %9 = memref.load %arg3[%c0_5] : memref<2xf32, #tpu.memory_space<smem>>
    %10 = vector.broadcast %9 : f32 to vector<1x1xf32>
    %11 = arith.addf %8, %10 : vector<1x1xf32>
    %12 = vector.extract_strided_slice %7 {offsets = [1, 0], sizes = [1, 1], strides = [1, 1]} : vector<2x1xf32> to vector<1x1xf32>
    %c1 = arith.constant 1 : index
    %13 = memref.load %arg3[%c1] : memref<2xf32, #tpu.memory_space<smem>>
    %14 = vector.broadcast %13 : f32 to vector<1x1xf32>
    %15 = arith.addf %12, %14 : vector<1x1xf32>
    %16 = tpu.concatenate %11, %15 in 1 : vector<1x1xf32>, vector<1x1xf32> -> vector<1x2xf32>
    %c0_6 = arith.constant 0 : index
    %c0_7 = arith.constant 0 : index
    %17 = vector.load %arg4[%c0_6, %c0_7] : memref<1x2xf32, #tpu.memory_space<vmem>>, vector<1x2xf32>
    tpu.vector_store %arg4[%c0_6, %c0_7], %16 {strides = array<i32>} : memref<1x2xf32, #tpu.memory_space<vmem>>, vector<1x2xf32>,
    return
  }
}

</mosaic_0001>

<bundles_post_ra>
// kernel: tpu_custom_call.1
= control target key start
LH: loop header
LB: loop body
LE: loop exit
PB: predicated region body
PF: predicated region fallthrough
CT: control target
= control target key end

     0   :  { %9 = vsyncpa [#allocation3], 0  ;;  %s290_s0 = inlined_call_operand.hbm [shape: f32[1,32], index: 0, kind: input, shape index: {}]   ;;  %s291_s1 = inlined_call_operand.hbm [shape: f32[1,32], index: 1, kind: input, shape index: {}]   ;;  %s292_s2 = inlined_call_operand.hbm [shape: f32[2,64], index: 2, kind: input, shape index: {}]   ;;  %s293_s3 = inlined_call_operand.vmem [shape: f32[2], index: 3, kind: input, shape index: {}]   ;;  %s294_s4 = inlined_call_operand.hbm [shape: f32[1,2], index: 4, kind: output, shape index: {}]  }
   0x1   :  { %10 = vsyncpa [#allocation7], 0 }
   0x2   :  { %11 = vsyncpa [#allocation5], 0  ;;  %s29_s17 = sshll.u32 %s291_s1, 4  ;;  %s30_s17 = int_to_ptr.hbm [resolvable:$true] %s29_s17 }
   0x3   :  { %12 = vsyncpa [#allocation4], 0  ;;  %s244_s18 = smov [#allocation6]   ;;  %s18_s22 = sshll.u32 %s290_s0, 4  ;;  %s19_s22 = int_to_ptr.hbm [resolvable:$true] %s18_s22 }
   0x4   :  { %s31_s19 = sshll.u32 %s244_s18, 4  ;;  %s245_s23 = smov [#allocation2]   ;;  %s32_s19 = int_to_ptr.vmem [resolvable:$true] %s31_s19 }
   0x5   :  { %34 = dma.hbm_to_vmem [thread:$0]  %s30_s17, 16, %s32_s19, [#allocation7]  }
   0x6   :  { %s20_s24 = sshll.u32 %s245_s23, 4  ;;  %s40_s27 = sshll.u32 %s292_s2, 4  ;;  %s21_s24 = int_to_ptr.vmem [resolvable:$true] %s20_s24  ;;  %s41_s27 = int_to_ptr.hbm [resolvable:$true] %s40_s27 }
   0x7   :  { %23 = dma.hbm_to_vmem [thread:$0]  %s19_s22, 16, %s21_s24, [#allocation3]  }
   0x8   :  { %s51_s29 = sshll.u32 %s293_s3, 4  ;;  %s246_s30 = smov [#allocation8]   ;;  %s52_s29 = int_to_ptr.vmem [resolvable:$true] %s51_s29 }
   0x9   :  { %s42_s5 = sshll.u32 %s246_s30, 4  ;;  %s247_s0 = smov [#allocation9]   ;;  %s43_s5 = int_to_ptr.vmem [resolvable:$true] %s42_s5 }
   0xa   :  { %45 = dma.hbm_to_vmem [thread:$0]  %s41_s27, 32, %s43_s5, [#allocation7]  }
   0xb   :  { %54 = dma.vmem_to_smem %s52_s29, 16, %s247_s0, [#allocation5]  }
   0xc   :  { %236 = dma.done.wait [#allocation3], 16  }
   0xd   :  { %237 = vsyncadd [#allocation3], 4294967280 }
   0xe   :  { %238 = dma.done.wait [#allocation7], 48  }
   0xf   :  { %239 = vsyncadd [#allocation7], 4294967248 }
  0x10   :  { %240 = dma.done.wait [#allocation5], 16  }
  0x11   :  { %241 = vsyncadd [#allocation5], 4294967280 }
  0x12   :  { %71 = sfence }
  0x13   :  { %v127_v0 = vld [vmem:[#allocation6] ss:$0 sm:$0xff]  ;;  %s248_s2 = smov 32   ;;  %vm79_vm0 = vcmask 261120   ;;  %v72_v1 = vld [vmem:[#allocation2] sm:$0x1] }
  0x14   :  { %76 = vrot.lane.b32.xlu0 %v127_v0, %s248_s2  ;;  %v81_v4 = vld [vmem:[#allocation8] sm:$0x3]  ;;  %vm84_vm1 = vcmask 517120   ;;  %s120_s3 = sld [smem:[#allocation9 + $0x1]]  ;;  %s249_s7 = smov [#allocation10]   ;;  %vm97_vm2 = vcmask 7168  }
  0x15   :  { %s88_s6 = sld [smem:[#allocation9]]  ;;  %s106_s8 = sshll.u32 %s249_s7, 4  ;;  %vm99_vm3 = vcmask 8192   ;;  %s107_s8 = int_to_ptr.vmem [resolvable:$true] %s106_s8 }
  0x16   :  { %s108_s11 = sshll.u32 %s294_s4, 4  ;;  %s109_s11 = int_to_ptr.hbm [resolvable:$true] %s108_s11 }
  0x1a   :  { %v92_v8 = vstv %s120_s3 }
  0x1b   :  { %v89_v9 = vstv %s88_s6 }
  0x86   :  { %v77_v2 = vpop.permute.xlu0 %76 }
  0x87   :  { %v80_v3 = vsel %vm79_vm0, %v72_v1, %v77_v2 }
  0x88   :  { %v82_v5 = vperm.slane %v80_v3, 0 }
  0x8a   :  { %v83_v6 = vmul.f32 %v82_v5, %v81_v4 }
  0x8c   :  { %v85_v7 = vsel %vm84_vm1, %v83_v6, 0.0 }
  0x8d   :  { %86 = vadd.xlane.f32.xlu0 %v85_v7 }
 0x100   :  { %v87_v10 = vpop.xlane.xlu0 %86 }
 0x101   :  { %v93_v11 = vadd.f32 %v92_v8, %v87_v10  ;;  %v90_v12 = vadd.f32 %v89_v9, %v87_v10 }
 0x103   :  { %v95_v13 = vrot.slane %v93_v11, 1 }
 0x105   :  { %v98_v14 = vsel %vm97_vm2, %v90_v12, %v95_v13 }
 0x106   :  { %100 = vst.msk [vmem:[#allocation10] sm:$0x1] %vm99_vm3, %v98_v14 }
 0x107   :  { %111 = dma.vmem_to_hbm [thread:$0]  %s107_s8, 16, %s109_s11, [#allocation4]  }
 0x108   :  { %242 = dma.done.wait [#allocation4], 16  }
 0x109   :  { %243 = vsyncadd [#allocation4], 4294967280 }
 0x10a   :  { %116 = vsyncpa [#allocation3], 1 }
 0x10b   :  { %117 = vsyncpa [#allocation7], 1 }
 0x10c   :  { %118 = vsyncpa [#allocation4], 1 }
 0x10d   :  { %119 = vsyncpa [#allocation5], 1 }

</bundles_post_ra>
